<compile_context>
chip_gen: v7x
topology: tpu7x:2x2x1
jax: 0.10.0
libtpu: 0.0.40
codegen_flags: <defaults>
</compile_context>

<pallas_src>
import math

import jax
import jax.numpy as jnp
import numpy as np
from jax.experimental import pallas as pl
from jax.experimental.pallas import tpu as pltpu


# ------------------------------ helpers -------------------------------------

def find_multiple(n: int, k: int) -> int:
    if n % k == 0:
        return n
    return n + k - (n % k)


def _pick_tile(dim: int, candidates, prefer_multi_block: bool = True) -> int:
    """Largest candidate that divides `dim`.

    If `prefer_multi_block`, prefer a candidate that yields >= 2 blocks
    (so both v7x TensorCores get work); fall back to a single-block divisor,
    then to the full dim.
    """
    single = None
    for c in candidates:
        if c <= dim and dim % c == 0:
            if (not prefer_multi_block) or dim // c >= 2:
                return c
            if single is None:
                single = c
    return single if single is not None else dim


def _tile_m(M: int) -> int:
    """Row-tile for the (padded) M axis. bf16 needs sublane multiples of 16."""
    for c in (512, 256, 128, 64, 32, 16):
        if M >= c:
            return c
    return 16


def _vmem_limit(footprint_bytes: int) -> int:
    # Raise above v5e's 16 MiB scoped default; stay under v7x's 64 MiB physical.
    return int(min(64 * 2**20, max(32 * 2**20, 2 * footprint_bytes)))


# --------------- fused gated up-projection: silu(x@W1) * (x@W2) --------------

def _gated_up_kernel(x_ref, w1_ref, w2_ref, o_ref, acc1_ref, acc2_ref):
    @pl.when(pl.program_id(2) == 0)
    def _init():
        acc1_ref[...] = jnp.zeros_like(acc1_ref)
        acc2_ref[...] = jnp.zeros_like(acc2_ref)

    x = x_ref[...]                                     # bf16 tile
    acc1_ref[...] += jnp.dot(x, w1_ref[...], preferred_element_type=jnp.float32)
    acc2_ref[...] += jnp.dot(x, w2_ref[...], preferred_element_type=jnp.float32)

    @pl.when(pl.program_id(2) == pl.num_programs(2) - 1)
    def _finalize():
        a = acc1_ref[...]                              # f32
        # silu(a) = a * sigmoid(a); exp + reciprocal both ride the EUP slot.
        silu_a = a * pl.reciprocal(1.0 + jnp.exp(-a), approx=True)
        o_ref[...] = (silu_a * acc2_ref[...]).astype(o_ref.dtype)


def gated_up_proj(x2d, w1, w2, tm):
    """silu(x2d @ w1) * (x2d @ w2) in bf16.  x2d: (M, K); w1/w2: (K, N)."""
    M, K = x2d.shape
    N = w1.shape[1]
    tn = _pick_tile(N, (512, 256, 128), prefer_multi_block=True)
    tk = _pick_tile(K, (1024, 512, 256, 128), prefer_multi_block=False)
    grid = (M // tm, N // tn, K // tk)

    itm = 2  # bf16 operands + bf16 output
    footprint = 2 * (tm * tk + 2 * tk * tn + tm * tn) * itm + 2 * tm * tn * 4
    cost = pl.CostEstimate(
        flops=2 * 2 * M * N * K + 4 * M * N,
        transcendentals=2 * M * N,
        bytes_accessed=itm * (M * K * (N // tn)
                              + 2 * K * N * (M // tm)
                              + M * N),
    )
    return pl.pallas_call(
        _gated_up_kernel,
        out_shape=jax.ShapeDtypeStruct((M, N), jnp.bfloat16),
        grid_spec=pltpu.PrefetchScalarGridSpec(
            num_scalar_prefetch=0,
            grid=grid,
            in_specs=[
                pl.BlockSpec((tm, tk), lambda i, j, k: (i, k)),
                pl.BlockSpec((tk, tn), lambda i, j, k: (k, j)),
                pl.BlockSpec((tk, tn), lambda i, j, k: (k, j)),
            ],
            out_specs=pl.BlockSpec((tm, tn), lambda i, j, k: (i, j)),
            scratch_shapes=[
                pltpu.VMEM((tm, tn), jnp.float32),
                pltpu.VMEM((tm, tn), jnp.float32),
            ],
        ),
        compiler_params=pltpu.CompilerParams(
            dimension_semantics=("parallel", "parallel", "arbitrary"),
            vmem_limit_bytes=_vmem_limit(footprint)),
        cost_estimate=cost,
    )(x2d, w1, w2)


# --------------------------- tiled matmul kernel -----------------------------

def _matmul_kernel(x_ref, w_ref, o_ref, acc_ref):
    @pl.when(pl.program_id(2) == 0)
    def _init():
        acc_ref[...] = jnp.zeros_like(acc_ref)

    acc_ref[...] += jnp.dot(
        x_ref[...], w_ref[...], preferred_element_type=jnp.float32)

    @pl.when(pl.program_id(2) == pl.num_programs(2) - 1)
    def _finalize():
        o_ref[...] = acc_ref[...].astype(o_ref.dtype)


def matmul_pallas(x2d, w, tm, out_dtype):
    """y = x2d @ w   (x2d: (M, K) bf16, w: (K, N) bf16) -- bias-free Linear."""
    M, K = x2d.shape
    N = w.shape[1]
    tn = _pick_tile(N, (512, 256, 128), prefer_multi_block=True)
    tk = _pick_tile(K, (1024, 512, 256, 128), prefer_multi_block=False)
    grid = (M // tm, N // tn, K // tk)

    itm = 2  # bf16 operands
    out_itemsize = jnp.dtype(out_dtype).itemsize
    footprint = (2 * (tm * tk + tk * tn) * itm
                 + 2 * tm * tn * out_itemsize + tm * tn * 4)
    cost = pl.CostEstimate(
        flops=2 * M * N * K,
        transcendentals=0,
        bytes_accessed=(itm * (M * K * (N // tn) + K * N * (M // tm))
                        + out_itemsize * M * N),
    )
    return pl.pallas_call(
        _matmul_kernel,
        out_shape=jax.ShapeDtypeStruct((M, N), out_dtype),
        grid_spec=pltpu.PrefetchScalarGridSpec(
            num_scalar_prefetch=0,
            grid=grid,
            in_specs=[
                pl.BlockSpec((tm, tk), lambda i, j, k: (i, k)),
                pl.BlockSpec((tk, tn), lambda i, j, k: (k, j)),
            ],
            out_specs=pl.BlockSpec((tm, tn), lambda i, j, k: (i, j)),
            scratch_shapes=[pltpu.VMEM((tm, tn), jnp.float32)],
        ),
        compiler_params=pltpu.CompilerParams(
            dimension_semantics=("parallel", "parallel", "arbitrary"),
            vmem_limit_bytes=_vmem_limit(footprint)),
        cost_estimate=cost,
    )(x2d, w)


# ----------------------------- module wrapper --------------------------------

class MLPPallas:
    """Pallas port of lit-llama MLP (SwiGLU feed-forward, bias-free)."""

    def __init__(self, n_embd: int, key, param_dtype=jnp.bfloat16):
        hidden_dim = 4 * n_embd
        n_hidden = find_multiple(int(2 * hidden_dim / 3), 256)
        self.n_embd = n_embd
        self.n_hidden = n_hidden

        k1, k2, k3 = jax.random.split(key, 3)
        scale = 0.02
        # PyTorch Linear weight is (out, in); store the transpose so kernels
        # compute x @ W^T directly (no runtime transposes). bf16 for MXU.
        self.w_fc1_t = (scale * jax.random.normal(
            k1, (n_embd, n_hidden), jnp.float32)).astype(param_dtype)
        self.w_fc2_t = (scale * jax.random.normal(
            k2, (n_embd, n_hidden), jnp.float32)).astype(param_dtype)
        self.w_proj_t = (scale * jax.random.normal(
            k3, (n_hidden, n_embd), jnp.float32)).astype(param_dtype)

    def __call__(self, x):
        B, T, C = x.shape
        out_dtype = x.dtype
        M = B * T
        x2d = x.reshape(M, C).astype(jnp.bfloat16)

        # Pad M up to a multiple of the chosen row tile so tiling never falls
        # back to one giant un-pipelined block on awkward sequence lengths.
        tm = _tile_m(M)
        M_pad = find_multiple(M, tm)
        if M_pad != M:
            x2d = jnp.pad(x2d, ((0, M_pad - M), (0, 0)))

        # fused: silu(x @ W1) * (x @ W2) -- hidden activation hits HBM once,
        # in bf16.
        h = gated_up_proj(x2d, self.w_fc1_t, self.w_fc2_t, tm)   # (M_pad, n_hidden)
        y = matmul_pallas(h, self.w_proj_t, tm, out_dtype)       # (M_pad, C)

        if M_pad != M:
            y = y[:M]
        return y.reshape(B, T, C)


# ------------------------- pure-JAX reference --------------------------------

def reference_forward(x, w_fc1_t, w_fc2_t, w_proj_t):
    xf = x.astype(jnp.float32)
    w1 = w_fc1_t.astype(jnp.float32)
    w2 = w_fc2_t.astype(jnp.float32)
    w3 = w_proj_t.astype(jnp.float32)
    h = jax.nn.silu(xf @ w1) * (xf @ w2)
    return h @ w3


# --------------------------------- main ---------------------------------------

if __name__ == "__main__":
    # small config in the spirit of llama_configs['tiny']: n_embd=128
    B, T, n_embd = 2, 8, 128

    key = jax.random.PRNGKey(0)
    kx, kw = jax.random.split(key)
    x = jax.random.normal(kx, (B, T, n_embd), dtype=jnp.float32)

    mlp = MLPPallas(n_embd, kw)

    y = mlp(x)
    y = jax.block_until_ready(y)

    y_ref = reference_forward(x, mlp.w_fc1_t, mlp.w_fc2_t, mlp.w_proj_t)

    assert y.shape == (B, T, n_embd)
    y_np = np.asarray(y, dtype=np.float32)
    yr_np = np.asarray(y_ref, dtype=np.float32)
    max_diff = float(np.max(np.abs(y_np - yr_np)))
    ref_scale = float(np.max(np.abs(yr_np))) + 1e-6
    # bf16 datapath (x cast, bf16 h, approx reciprocal) vs f32 reference.
    assert max_diff <= 2e-2 * ref_scale + 1e-4, \
        "max abs diff %g (ref scale %g)" % (max_diff, ref_scale)

    print("KERNEL_OK")
</pallas_src>

<mosaic_0001>
module attributes {stable_mosaic.version = 11 : i64} {
  func.func @_gated_up_kernel(%arg0: i32, %arg1: i32, %arg2: i32, %arg3: memref<16x128xbf16, #tpu.memory_space<vmem>>, %arg4: memref<128x256xbf16, #tpu.memory_space<vmem>>, %arg5: memref<128x256xbf16, #tpu.memory_space<vmem>>, %arg6: memref<16x256xbf16, #tpu.memory_space<vmem>>, %arg7: memref<16x256xf32, #tpu.memory_space<vmem>>, %arg8: memref<16x256xf32, #tpu.memory_space<vmem>>) attributes {dimension_semantics = [#tpu.dimension_semantics<parallel>, #tpu.dimension_semantics<parallel>, #tpu.dimension_semantics<arbitrary>], iteration_bounds = array<i64: 1, 2, 1>, scalar_prefetch = 0 : i64, scratch_operands = 2 : i64, tpu.core_type = #tpu.core_type<tc>, window_params = [{transform_indices = @transform_0, window_bounds = array<i64: 16, 128>}, {transform_indices = @transform_1, window_bounds = array<i64: 128, 256>}, {transform_indices = @transform_2, window_bounds = array<i64: 128, 256>}, {transform_indices = @transform_3, window_bounds = array<i64: 16, 256>}]} {
    %c0_i32 = arith.constant 0 : i32
    %0 = arith.cmpi eq, %arg2, %c0_i32 : i32
    %1 = arith.extui %0 : i1 to i32
    %c0_i32_0 = arith.constant 0 : i32
    %2 = arith.cmpi ne, %1, %c0_i32_0 : i32
    scf.if %2 {
      %cst_17 = arith.constant 0.000000e+00 : f32
      %17 = vector.broadcast %cst_17 : f32 to vector<16x256xf32>
      %c0_18 = arith.constant 0 : index
      %c0_19 = arith.constant 0 : index
      %18 = vector.load %arg7[%c0_18, %c0_19] : memref<16x256xf32, #tpu.memory_space<vmem>>, vector<16x256xf32>
      tpu.vector_store %arg7[%c0_18, %c0_19], %17 {strides = array<i32>} : memref<16x256xf32, #tpu.memory_space<vmem>>, vector<16x256xf32>,
      %cst_20 = arith.constant 0.000000e+00 : f32
      %19 = vector.broadcast %cst_20 : f32 to vector<16x256xf32>
      %c0_21 = arith.constant 0 : index
      %c0_22 = arith.constant 0 : index
      %20 = vector.load %arg8[%c0_21, %c0_22] : memref<16x256xf32, #tpu.memory_space<vmem>>, vector<16x256xf32>
      tpu.vector_store %arg8[%c0_21, %c0_22], %19 {strides = array<i32>} : memref<16x256xf32, #tpu.memory_space<vmem>>, vector<16x256xf32>,
    } else {
    }
    %c0 = arith.constant 0 : index
    %c0_1 = arith.constant 0 : index
    %3 = vector.load %arg3[%c0, %c0_1] : memref<16x128xbf16, #tpu.memory_space<vmem>>, vector<16x128xbf16>
    %c0_2 = arith.constant 0 : index
    %c0_3 = arith.constant 0 : index
    %4 = vector.load %arg7[%c0_2, %c0_3] : memref<16x256xf32, #tpu.memory_space<vmem>>, vector<16x256xf32>
    %c0_4 = arith.constant 0 : index
    %c0_5 = arith.constant 0 : index
    %5 = vector.load %arg4[%c0_4, %c0_5] : memref<128x256xbf16, #tpu.memory_space<vmem>>, vector<128x256xbf16>
    %cst = arith.constant dense<0.000000e+00> : vector<16x256xf32>
    %6 = tpu.matmul %3, %5, %cst {dimension_numbers = #tpu.dot_dimension_numbers<[1], [0], [0], [1], [0, 0, 1, 1], [], []>} : vector<16x128xbf16>, vector<128x256xbf16>, vector<16x256xf32> -> vector<16x256xf32>
    %7 = arith.addf %4, %6 : vector<16x256xf32>
    %c0_6 = arith.constant 0 : index
    %c0_7 = arith.constant 0 : index
    %8 = vector.load %arg7[%c0_6, %c0_7] : memref<16x256xf32, #tpu.memory_space<vmem>>, vector<16x256xf32>
    tpu.vector_store %arg7[%c0_6, %c0_7], %7 {strides = array<i32>} : memref<16x256xf32, #tpu.memory_space<vmem>>, vector<16x256xf32>,
    %c0_8 = arith.constant 0 : index
    %c0_9 = arith.constant 0 : index
    %9 = vector.load %arg8[%c0_8, %c0_9] : memref<16x256xf32, #tpu.memory_space<vmem>>, vector<16x256xf32>
    %c0_10 = arith.constant 0 : index
    %c0_11 = arith.constant 0 : index
    %10 = vector.load %arg5[%c0_10, %c0_11] : memref<128x256xbf16, #tpu.memory_space<vmem>>, vector<128x256xbf16>
    %cst_12 = arith.constant dense<0.000000e+00> : vector<16x256xf32>
    %11 = tpu.matmul %3, %10, %cst_12 {dimension_numbers = #tpu.dot_dimension_numbers<[1], [0], [0], [1], [0, 0, 1, 1], [], []>} : vector<16x128xbf16>, vector<128x256xbf16>, vector<16x256xf32> -> vector<16x256xf32>
    %12 = arith.addf %9, %11 : vector<16x256xf32>
    %c0_13 = arith.constant 0 : index
    %c0_14 = arith.constant 0 : index
    %13 = vector.load %arg8[%c0_13, %c0_14] : memref<16x256xf32, #tpu.memory_space<vmem>>, vector<16x256xf32>
    tpu.vector_store %arg8[%c0_13, %c0_14], %12 {strides = array<i32>} : memref<16x256xf32, #tpu.memory_space<vmem>>, vector<16x256xf32>,
    %c0_i32_15 = arith.constant 0 : i32
    %14 = arith.cmpi eq, %arg2, %c0_i32_15 : i32
    %15 = arith.extui %14 : i1 to i32
    %c0_i32_16 = arith.constant 0 : i32
    %16 = arith.cmpi ne, %15, %c0_i32_16 : i32
    scf.if %16 {
      %c0_17 = arith.constant 0 : index
      %c0_18 = arith.constant 0 : index
      %17 = vector.load %arg7[%c0_17, %c0_18] : memref<16x256xf32, #tpu.memory_space<vmem>>, vector<16x256xf32>
      %cst_19 = arith.constant 0.000000e+00 : f32
      %18 = vector.broadcast %cst_19 : f32 to vector<16x256xf32>
      %19 = arith.subf %18, %17 : vector<16x256xf32>
      %20 = math.exp %19 : vector<16x256xf32>
      %cst_20 = arith.constant 1.000000e+00 : f32
      %21 = vector.broadcast %cst_20 : f32 to vector<16x256xf32>
      %22 = arith.addf %21, %20 : vector<16x256xf32>
      %23 = tpu.reciprocal %22 {approx = true} : vector<16x256xf32> -> vector<16x256xf32>
      %24 = arith.mulf %17, %23 : vector<16x256xf32>
      %c0_21 = arith.constant 0 : index
      %c0_22 = arith.constant 0 : index
      %25 = vector.load %arg8[%c0_21, %c0_22] : memref<16x256xf32, #tpu.memory_space<vmem>>, vector<16x256xf32>
      %26 = arith.mulf %24, %25 : vector<16x256xf32>
      %27 = arith.truncf %26 : vector<16x256xf32> to vector<16x256xbf16>
      %c0_23 = arith.constant 0 : index
      %c0_24 = arith.constant 0 : index
      %28 = vector.load %arg6[%c0_23, %c0_24] : memref<16x256xbf16, #tpu.memory_space<vmem>>, vector<16x256xbf16>
      tpu.vector_store %arg6[%c0_23, %c0_24], %27 {strides = array<i32>} : memref<16x256xbf16, #tpu.memory_space<vmem>>, vector<16x256xbf16>,
    } else {
    }
    return
  }
  func.func @transform_0(%arg0: i32, %arg1: i32, %arg2: i32) -> (i32, i32) {
    %c0_i32 = arith.constant 0 : i32
    return %arg0, %arg2 : i32, i32
  }
  func.func @transform_1(%arg0: i32, %arg1: i32, %arg2: i32) -> (i32, i32) {
    %c0_i32 = arith.constant 0 : i32
    return %arg2, %arg1 : i32, i32
  }
  func.func @transform_2(%arg0: i32, %arg1: i32, %arg2: i32) -> (i32, i32) {
    %c0_i32 = arith.constant 0 : i32
    return %arg2, %arg1 : i32, i32
  }
  func.func @transform_3(%arg0: i32, %arg1: i32, %arg2: i32) -> (i32, i32) {
    %c0_i32 = arith.constant 0 : i32
    return %arg0, %arg1 : i32, i32
  }
}

</mosaic_0001>

<bundles_post_ra>
// kernel: tpu_custom_call.1
= control target key start
LH: loop header
LB: loop body
LE: loop exit
PB: predicated region body
PF: predicated region fallthrough
CT: control target
= control target key end

     0   :  { %8 = vsyncpa [#allocation5], 0  ;;  %s1540_s0 = inlined_call_operand.hbm [shape: bf16[16,128], index: 0, kind: input, shape index: {}]   ;;  %s1541_s1 = inlined_call_operand.hbm [shape: bf16[128,512], index: 1, kind: input, shape index: {}]   ;;  %s1542_s2 = inlined_call_operand.hbm [shape: bf16[128,512], index: 2, kind: input, shape index: {}]   ;;  %s1543_s3 = inlined_call_operand.hbm [shape: bf16[16,512], index: 3, kind: output, shape index: {}]  }
   0x1   :  { %9 = vsyncpa [#allocation8], 0 }
   0x2   :  { %11 = vsyncpa [#allocation8 + $0x1], 0 }
   0x3   :  { %12 = vsyncpa [#allocation6], 0 }
   0x4   :  { %14 = vsyncpa [#allocation6 + $0x1], 0  ;;  %s1234_s12 = smov 0   ;;  %s1236_s13 = smov 0  }
   0x5   :  { %s1238_s14 = smov 0   ;;  %s1240_s15 = smov 0  }
   0x6   :  { %s1242_s16 = smov 0   ;;  %s1244_s17 = smov 0  }
   0x7 LB: > { %s35_s18 = sadd.s32 1, %s1195_s16  ;;  %s76_s19 = sadd.s32 1, %s1187_s14  ;;  %s1199_s17 = sphi %s1244_s17, %s20_s17   ;;  %s1195_s16 = sphi %s1242_s16, %s1569_s16   ;;  %s1191_s15 = sphi %s1240_s15, %s1568_s15   ;;  %s1187_s14 = sphi %s1238_s14, %s1567_s14   ;;  %s1183_s13 = sphi %s1236_s13, %s1566_s13   ;;  %s1179_s12 = sphi %s1234_s12, %s1565_s12  }
   0x8   : > { %p37_p0 = scmp.ge.s32.totalorder %s35_s18, 2  ;;  %p83_p1 = scmp.ne.s32.totalorder %s1187_s14, %s1183_s13 }
   0x9   : > { %p84_p2 = scmp.eq.s32.totalorder %s1199_s17, 0  ;;  %p899_p5 = scmp.lt.s32.totalorder %s1199_s17, 2 }
   0xa   : > { %s1571_s18 = smov (%p37_p0, %s35_s18), 0  ;;  %s186_s21 = sand.u32 1, %s1199_s17  }
   0xb   : > { %p85_p4 = por %p84_p2, %p83_p1  ;;  %s72_s20 = ssub.s32 %s1195_s16, %s1571_s18 }
   0xc   : > { %p74_p6 = scmp.eq.s32.totalorder %s72_s20, 0  ;;  %s188_s22 = sand.u32 1, %s1187_s14  }
   0xd   : > { %s868_s23 = sshll.u32 %s1195_s16, 7  ;;  %s1284_s25 = sshll.u32 %s188_s22, 7 }
   0xe   : > { %s1282_s24 = scalar_select %p74_p6, %s1187_s14, %s76_s19  }
   0xf   : > { %s1291_s28 = scalar_lea.hbm %s1541_s1, %s868_s23  ;;  %p1293_p7 = pnand %p899_p5, %p85_p4 }
  0x10   : > { %s190_s30 = scalar_lea.vmem [#allocation7], %s1284_s25  ;;  %s1300_s5 = scalar_lea.sflag [#allocation8], %s186_s21 }
  0x11   : > { %s200_s4 = sshll.u32 %s190_s30, 4  ;;  %s1025_s6 = scalar_lea.hbm %s1291_s28, 2048  ;;  %s1298_s4 = int_to_ptr.vmem [resolvable:$true] %s200_s4 }
  0x12   : > { %p1026_p8 = scmp.ne.s32.totalorder %s1291_s28, %s1025_s6  ;;  %p1027_p9 = pneg %p1293_p7 }
  0x13   : > { %s1030_s9 = scalar_lea.hbm %s1541_s1, 4096  ;;  %p1031_p12 = scmp.lt.u32.totalorder %s1291_s28, %s1541_s1 }
  0x14   : > { %p1028_p10 = pnand %p1027_p9, %p1026_p8  ;;  %p1032_p13 = scmp.lt.u32.totalorder %s1030_s9, %s1025_s6 }
  0x15   : > { %p1034_p2 = scmp.lt.u32.totalorder %s1025_s6, %s1291_s28 }
  0x16   : > { %p1029_p11 = pneg %p1028_p10  ;;  %p1033_p0 = por %p1032_p13, %p1031_p12 }
  0x18   : > { %p1035_p4 = por %p1034_p2, %p1033_p0 }
  0x1a   : > { %p1036_p5 = pnand %p1035_p4, %p1029_p11 }
  0x1c   : > { %1039 = shalt.err (!%p1036_p5)
}
  0x1d   : > { %s1040_s19 = scalar_lea.vmem %s1298_s4, 2048  ;;  %s1201_s20 = smov [#allocation7]  }
  0x1e   : > { %p1041_p6 = scmp.ne.s32.totalorder %s1298_s4, %s1040_s19  ;;  %s1045_s21 = sshll.u32 %s1201_s20, 4  ;;  %s1046_s21 = int_to_ptr.vmem [resolvable:$false] %s1045_s21 }
  0x1f   : > { %s1047_s22 = scalar_lea.vmem %s1046_s21, 4096  ;;  %p1048_p3 = scmp.lt.s32.totalorder %s1298_s4, %s1046_s21 }
  0x20   : > { %p1043_p8 = pnand %p1041_p6, %p1027_p9  ;;  %p1049_p12 = scmp.lt.s32.totalorder %s1047_s22, %s1040_s19 }
  0x22   : > { %p1044_p10 = pneg %p1043_p8  ;;  %p1050_p13 = por %p1049_p12, %p1048_p3 }
  0x24   : > { %p1051_p0 = pnand %p1050_p13, %p1044_p10 }
  0x26   : > { %1054 = shalt.err (!%p1051_p0)
}
  0x27   : > { %s1544_s26 = smov 256   ;;  %s1203_s27 = smov 128  }
  0x28   : > { %s1204_s30 = smov 8   ;;  %s1336_s8 = scalar_lea.hbm %s1542_s2, %s868_s23 }
  0x29   : > { %890 = dma.hbm_to_vmem [thread:$0]  (!%p1293_p7), %s1291_s28, 2048, %s1298_s4, %s1300_s5, %s1544_s26, %s1203_s27, %s1204_s30  }
  0x2a   : > { %s214_s9 = scalar_lea.vmem [#allocation9], %s1284_s25  ;;  %s1340_s11 = sadd.s32 4294967295, %s1199_s17  }
  0x2b   : > { %s224_s10 = sshll.u32 %s214_s9, 4  ;;  %s813_s19 = sadd.s32 4294967294, %s1199_s17   ;;  %s1366_s10 = int_to_ptr.vmem [resolvable:$true] %s224_s10 }
  0x2c   : > { %p89_p3 = scmp.ne.s32.totalorder %s1183_s13, %s1179_s12  ;;  %p1545_p11 = scmp.eq.s32.totalorder %s1340_s11, 0 }
  0x2d   : > { %p143_p2 = scmp.eq.s32.totalorder %s1340_s11, 1  ;;  %p149_p4 = scmp.eq.s32.totalorder %s813_s19, 1 }
  0x2e   : > { %p1349_p5 = por %p1545_p11, %p89_p3  ;;  %p814_p6 = scmp.ge.s32.totalorder %s1199_s17, 1 }
  0x2f   : > { %p1357_p8 = por %p143_p2, %p83_p1  ;;  %p1361_p10 = por %p149_p4, %p89_p3 }
  0x30   : > { %s1550_s28 = scalar_select %p1349_p5, 1, 0 }
  0x31   : > { %s1551_s23 = scalar_select %p1357_p8, 1, 0 }
  0x32   : > { %s1552_s25 = scalar_select %p1361_p10, 1, 0 }
  0x33   : > { %p156_p12 = scmp.lt.s32.totalorder %s1199_s17, 3  ;;  %s1205_s20 = smov [#allocation4]  }
  0x34   : > { %s172_s21 = sshll.u32 %s1205_s20, 4  ;;  %s1055_s22 = scalar_lea.hbm %s1336_s8, 2048  ;;  %s1374_s21 = int_to_ptr.vmem [resolvable:$true] %s172_s21 }
  0x35   : > { %p1368_p13 = pnand %p814_p6, %p156_p12  ;;  %p1056_p0 = scmp.ne.s32.totalorder %s1336_s8, %s1055_s22 }
  0x36   : > { %s1060_s9 = scalar_lea.hbm %s1542_s2, 4096  ;;  %p1061_p4 = scmp.lt.u32.totalorder %s1336_s8, %s1542_s2 }
  0x37   : > { %s1553_s4 = scalar_select %p1368_p13, 1, 0 }
  0x38   : > { %p1058_p3 = pnand %p1056_p0, %p1027_p9  ;;  %p1062_p6 = scmp.lt.u32.totalorder %s1060_s9, %s1055_s22 }
  0x39   : > { %p1064_p11 = scmp.lt.u32.totalorder %s1055_s22, %s1336_s8 }
  0x3a   : > { %p1059_p2 = pneg %p1058_p3  ;;  %p1063_p12 = por %p1062_p6, %p1061_p4 }
  0x3c   : > { %p1065_p1 = por %p1064_p11, %p1063_p12 }
  0x3e   : > { %p1066_p10 = pnand %p1065_p1, %p1059_p2 }
  0x40   : > { %1069 = shalt.err (!%p1066_p10)
}
  0x41   : > { %s1070_s20 = scalar_lea.vmem %s1366_s10, 2048  ;;  %s1206_s6 = smov [#allocation9]  }
  0x42   : > { %p1071_p0 = scmp.ne.s32.totalorder %s1366_s10, %s1070_s20  ;;  %s1075_s7 = sshll.u32 %s1206_s6, 4  ;;  %s1076_s7 = int_to_ptr.vmem [resolvable:$false] %s1075_s7 }
  0x43   : > { %s1077_s26 = scalar_lea.vmem %s1076_s7, 4096  ;;  %p1078_p5 = scmp.lt.s32.totalorder %s1366_s10, %s1076_s7 }
  0x44   : > { %p1073_p3 = pnand %p1071_p0, %p1027_p9  ;;  %p1079_p4 = scmp.lt.s32.totalorder %s1077_s26, %s1070_s20 }
  0x46   : > { %p1074_p8 = pneg %p1073_p3  ;;  %p1080_p6 = por %p1079_p4, %p1078_p5 }
  0x48   : > { %p1081_p11 = pnand %p1080_p6, %p1074_p8 }
  0x4a   : > { %1084 = shalt.err (!%p1081_p11)
}
  0x4b   : > { %s1554_s22 = smov 256   ;;  %p1555_p9 = scmp.eq.s32.totalorder %s1340_s11, 0 }
  0x4c   : > { %893 = dma.hbm_to_vmem [thread:$0]  (!%p1293_p7), %s1336_s8, 2048, %s1366_s10, %s1300_s5, %s1554_s22, %s1203_s27, %s1204_s30  }
  0x4d   : > { %p1556_p10 = pneg %p1368_p13  ;;  %s1085_s29 = scalar_lea.hbm %s1540_s0, 128 }
  0x4e   : > { %p1086_p5 = scmp.ne.s32.totalorder %s1540_s0, %s1085_s29  ;;  %p1092_p12 = scmp.lt.u32.totalorder %s1085_s29, %s1540_s0 }
  0x4f   : > { %p1408_p1 = pnand %p1556_p10, %p1555_p9 }
  0x51   : > { %p1087_p8 = pneg %p1408_p1 }
  0x53   : > { %p1088_p2 = pnand %p1087_p8, %p1086_p5 }
  0x55   : > { %p1089_p7 = pneg %p1088_p2 }
  0x57   : > { %p1094_p0 = pnand %p1092_p12, %p1089_p7 }
  0x59   : > { %1097 = shalt.err (!%p1094_p0)
}
  0x5a   : > { %s1098_s30 = scalar_lea.vmem %s1374_s21, 128  ;;  %p1106_p11 = scmp.lt.s32.totalorder %s1374_s21, %s1374_s21 }
  0x5b   : > { %p1099_p3 = scmp.ne.s32.totalorder %s1374_s21, %s1098_s30  ;;  %p1107_p9 = scmp.lt.s32.totalorder %s1098_s30, %s1098_s30 }
  0x5d   : > { %p1101_p4 = pnand %p1099_p3, %p1087_p8  ;;  %p1108_p10 = por %p1107_p9, %p1106_p11 }
  0x5f   : > { %p1102_p6 = pneg %p1101_p4 }
  0x61   : > { %p1109_p13 = pnand %p1108_p10, %p1102_p6 }
  0x63   : > { %1112 = shalt.err (!%p1109_p13)
}
  0x64   : > { %s1207_s8 = smov 64   ;;  %s1208_s10 = smov 4  }
  0x65   : > { %886 = dma.hbm_to_vmem [thread:$0]  (!%p1408_p1), %s1540_s0, 128, %s1374_s21, [#allocation5], %s1207_s8, %s1207_s8, %s1208_s10  }
  0x66   : > { %p1558_p5 = scmp.ne.s32.totalorder %s1553_s4, 0 }
  0x67   : > { %p1559_p8 = scmp.eq.s32.totalorder (!%p1558_p5), %s1340_s11, 0 }
  0x68   : > { %236 = sbr.rel (%p1558_p5) target bundleno = 416 (0x1a0), region = 32 }
  0x6f   : > { %1166 = dma.done.wait (%p1559_p8), [#allocation5], 128   ;;  %p1560_p2 = pmov %p1559_p8 }
  0x70   : > { %s242_s19 = sand.u32 1, %s1340_s11   ;;  %s1441_s20 = sand.u32 1, %s1183_s13  }
  0x71   : > { %1168 = vsyncadd (%p1560_p2), [#allocation5], 4294967168  ;;  %s825_s9 = sshll.u32 %s1441_s20, 7  ;;  %s243_s29 = scalar_lea.sflag [#allocation8], %s242_s19 }
  0x72   : > { %s1444_s6 = scalar_lea.vmem [#allocation7], %s825_s9  ;;  %p1561_p13 = scmp.ne.s32.totalorder %s1550_s28, 0 }
  0x74   : > { %1170 = dma.done.wait (%p1561_p13), %s243_s29, 4096  }
  0x75   : > { %1172 = vsyncadd (%p1561_p13), %s243_s29, 4294963200  ;;  %v1209_v0 = vmov 0   ;;  %v960_v1 = vld [vmem:[%s1444_s6 + $0x4] ss:$8 sps:$4 sm:$0xff]   ;;  %v962_v2 = vld [vmem:[%s1444_s6] ss:$8 sps:$4 sm:$0xff]  }
  0x76   : > { %443 = vmatprep.mubr.bf16.mxu0 %v1209_v0  ;;  %594 = vmatprep.mubr.bf16.mxu1 %v1209_v0  ;;  %v963_v3 = vld [vmem:[%s1444_s6 + $0x14] ss:$8 sps:$4 sm:$0xff]   ;;  %v965_v4 = vld [vmem:[%s1444_s6 + $0x10] ss:$8 sps:$4 sm:$0xff]   ;;  %v966_v5 = vld [vmem:[%s1444_s6 + $0x24] ss:$8 sps:$4 sm:$0xff]  }
  0x77   : > { %411 = vmatprep.subr.bf16.mxu0 %v960_v1  ;;  %v968_v6 = vld [vmem:[%s1444_s6 + $0x20] ss:$8 sps:$4 sm:$0xff]   ;;  %v969_v7 = vld [vmem:[%s1444_s6 + $0x34] ss:$8 sps:$4 sm:$0xff]   ;;  %s1457_s11 = scalar_lea.vmem [#allocation9], %s825_s9  ;;  %s827_s28 = sshll.u32 %s1441_s20, 4 }
  0x78   : > { %412 = vmatpush1.bf16.msra.mxu0 %v962_v2  ;;  %v981_v8 = vld [vmem:[%s1457_s11 + $0x4] ss:$8 sps:$4 sm:$0xff]   ;;  %v971_v9 = vld [vmem:[%s1444_s6 + $0x30] ss:$8 sps:$4 sm:$0xff]   ;;  %v985_v11 = vld [vmem:[%s1457_s11] ss:$8 sps:$4 sm:$0xff]  }
  0x79   : > { %413 = vmatprep.subr.bf16.mxu0 %v963_v3  ;;  %v972_v10 = vld [vmem:[%s1444_s6 + $0x44] ss:$8 sps:$4 sm:$0xff]   ;;  %562 = vmatprep.subr.bf16.mxu1 %v981_v8  ;;  %v987_v12 = vld [vmem:[%s1457_s11 + $0x14] ss:$8 sps:$4 sm:$0xff]   ;;  %v990_v13 = vld [vmem:[%s1457_s11 + $0x10] ss:$8 sps:$4 sm:$0xff]  }
  0x7a   : > { %563 = vmatpush1.bf16.msra.mxu1 %v985_v11  ;;  %v974_v14 = vld [vmem:[%s1444_s6 + $0x40] ss:$8 sps:$4 sm:$0xff]   ;;  %v991_v15 = vld [vmem:[%s1457_s11 + $0x24] ss:$8 sps:$4 sm:$0xff]   ;;  %v975_v16 = vld [vmem:[%s1444_s6 + $0x54] ss:$8 sps:$4 sm:$0xff]  }
  0x7b   : > { %564 = vmatprep.subr.bf16.mxu1 %v987_v12  ;;  %v993_v17 = vld [vmem:[%s1457_s11 + $0x20] ss:$8 sps:$4 sm:$0xff]   ;;  %v994_v18 = vld [vmem:[%s1457_s11 + $0x34] ss:$8 sps:$4 sm:$0xff]   ;;  %v977_v19 = vld [vmem:[%s1444_s6 + $0x50] ss:$8 sps:$4 sm:$0xff]  }
  0x7c   : > { %414 = vmatpush1.bf16.msra.mxu0 %v965_v4  ;;  %v978_v20 = vld [vmem:[%s1444_s6 + $0x64] ss:$8 sps:$4 sm:$0xff]   ;;  %v996_v21 = vld [vmem:[%s1457_s11 + $0x30] ss:$8 sps:$4 sm:$0xff]   ;;  %v980_v23 = vld [vmem:[%s1444_s6 + $0x60] ss:$8 sps:$4 sm:$0xff]  }
  0x7d   : > { %415 = vmatprep.subr.bf16.mxu0 %v966_v5  ;;  %v997_v22 = vld [vmem:[%s1457_s11 + $0x44] ss:$8 sps:$4 sm:$0xff]   ;;  %v983_v24 = vld [vmem:[%s1444_s6 + $0x74] ss:$8 sps:$4 sm:$0xff]   ;;  %v999_v25 = vld [vmem:[%s1457_s11 + $0x40] ss:$8 sps:$4 sm:$0xff]  }
  0x7e   : > { %565 = vmatpush1.bf16.msra.mxu1 %v990_v13  ;;  %v1000_v26 = vld [vmem:[%s1457_s11 + $0x54] ss:$8 sps:$4 sm:$0xff]   ;;  %v986_v27 = vld [vmem:[%s1444_s6 + $0x70] ss:$8 sps:$4 sm:$0xff]   ;;  %v1003_v30 = vld [vmem:[%s1457_s11 + $0x64] ss:$8 sps:$4 sm:$0xff]  }
  0x7f   : > { %566 = vmatprep.subr.bf16.mxu1 %v991_v15  ;;  %v1002_v28 = vld [vmem:[%s1457_s11 + $0x50] ss:$8 sps:$4 sm:$0xff]   ;;  %v1005_v31 = vld [vmem:[%s1457_s11 + $0x60] ss:$8 sps:$4 sm:$0xff]   ;;  %v1006_v32 = vld [vmem:[%s1457_s11 + $0x74] ss:$8 sps:$4 sm:$0xff]  }
  0x80   : > { %416 = vmatpush1.bf16.msra.mxu0 %v968_v6  ;;  %v989_v29 = vld [vmem:[#allocation4] sm:$0xff]   ;;  %s282_s4 = scalar_lea.vmem [#allocation10], %s827_s28  ;;  %s872_s7 = sshll.u32 %s1191_s15, 7 }
  0x81   : > { %417 = vmatprep.subr.bf16.mxu0 %v969_v7  ;;  %v1008_v33 = vld [vmem:[%s1457_s11 + $0x70] ss:$8 sps:$4 sm:$0xff]   ;;  %s683_s21 = sshll.u32 %s282_s4, 4  ;;  %s1491_s30 = scalar_lea.hbm %s1543_s3, %s872_s7  ;;  %s1486_s21 = int_to_ptr.vmem [resolvable:$true] %s683_s21 }
  0x82   : > { %567 = vmatpush1.bf16.msra.mxu1 %v993_v17  ;;  %s667_s8 = scalar_lea.sflag [#allocation6], %s1441_s20  ;;  %s1113_s10 = scalar_lea.vmem %s1486_s21, 256 }
  0x83   : > { %568 = vmatprep.subr.bf16.mxu1 %v994_v18  ;;  %p1114_p1 = scmp.ne.s32.totalorder %s1486_s21, %s1113_s10  ;;  %p1562_p7 = scmp.ne.s32.totalorder %s1551_s23, 0 }
  0x84   : > { %418 = vmatpush1.bf16.msra.mxu0 %v971_v9  ;;  %s1210_s15 = smov [#allocation10]  }
  0x85   : > { %419 = vmatprep.subr.bf16.mxu0 %v972_v10  ;;  %p1115_p12 = pnand %p1114_p1, %p1562_p7  ;;  %s1117_s26 = sshll.u32 %s1210_s15, 4  ;;  %s1118_s26 = int_to_ptr.vmem [resolvable:$false] %s1117_s26 }
  0x86   : > { %569 = vmatpush1.bf16.msra.mxu1 %v996_v21  ;;  %s1119_s22 = scalar_lea.vmem %s1118_s26, 512  ;;  %p1120_p3 = scmp.lt.s32.totalorder %s1486_s21, %s1118_s26 }
  0x87   : > { %570 = vmatprep.subr.bf16.mxu1 %v997_v22  ;;  %p1116_p0 = pneg %p1115_p12  ;;  %p1121_p4 = scmp.lt.s32.totalorder %s1119_s22, %s1113_s10 }
  0x88   : > { %420 = vmatpush1.bf16.msra.mxu0 %v974_v14 }
  0x89   : > { %421 = vmatprep.subr.bf16.mxu0 %v975_v16  ;;  %p1122_p6 = por %p1121_p4, %p1120_p3 }
  0x8a   : > { %571 = vmatpush1.bf16.msra.mxu1 %v999_v25 }
  0x8b   : > { %572 = vmatprep.subr.bf16.mxu1 %v1000_v26  ;;  %p1123_p11 = pnand %p1122_p6, %p1116_p0 }
  0x8c   : > { %422 = vmatpush1.bf16.msra.mxu0 %v977_v19 }
  0x8d   : > { %423 = vmatprep.subr.bf16.mxu0 %v978_v20 }
  0x8e   : > { %573 = vmatpush1.bf16.msra.mxu1 %v1002_v28 }
  0x8f   : > { %574 = vmatprep.subr.bf16.mxu1 %v1003_v30 }
  0x90   : > { %424 = vmatpush1.bf16.msra.mxu0 %v980_v23 }
  0x91   : > { %425 = vmatprep.subr.bf16.mxu0 %v983_v24 }
  0x92   : > { %575 = vmatpush1.bf16.msra.mxu1 %v1005_v31 }
  0x93   : > { %576 = vmatprep.subr.bf16.mxu1 %v1006_v32 }
  0x94   : > { %426 = vmatpush1.bf16.msra.mxu0 %v986_v27 }
  0x96   : > { %577 = vmatpush1.bf16.msra.mxu1 %v1008_v33 }
  0x97   : > { %444 = vmatmul.mubr.bf16.vlgmr.msra.gmra.mrb[0].mxu0 %v989_v29 }
  0x99   : > { %595 = vmatmul.mubr.bf16.vlgmr.msra.gmra.mrb[0].mxu1 %v989_v29 }
 0x16a   : > { %v445_v34 = vpop.f32.mrb[0].mxu0 }
 0x16b   : > { %v620_v35 = vsub.f32 0.0, %v445_v34  ;;  %v447_v36 = vpop.f32.mrb[1].mxu0 }
 0x16c   : > { %v621_v37 = vsub.f32 0.0, %v447_v36  ;;  %v449_v38 = vpop.f32.mrb[2].mxu0  ;;  %v596_v46 = vpop.f32.mrb[0].mxu1 }
 0x16d   : > { %v624_v39 = vmul.f32 1.442695, %v620_v35  ;;  %v622_v40 = vsub.f32 0.0, %v449_v38  ;;  %v451_v41 = vpop.f32.mrb[3].mxu0  ;;  %v598_v47 = vpop.f32.mrb[1].mxu1 }
 0x16e   : > { %v626_v42 = vmul.f32 1.442695, %v621_v37  ;;  %v623_v43 = vsub.f32 0.0, %v451_v41  ;;  %v600_v48 = vpop.f32.mrb[2].mxu1 }
 0x16f   : > { %1009 = vpow2.f32 %v624_v39  ;;  %v628_v44 = vmul.f32 1.442695, %v622_v40  ;;  %v602_v49 = vpop.f32.mrb[3].mxu1 }
 0x170   : > { %1011 = vpow2.f32 %v626_v42  ;;  %v630_v45 = vmul.f32 1.442695, %v623_v43 }
 0x171   : > { %1013 = vpow2.f32 %v628_v44 }
 0x172   : > { %1015 = vpow2.f32 %v630_v45 }
 0x179   : > { %v1010_v50 = vpop.eup %1009 }
 0x17a   : > { %v1012_v51 = vpop.eup %1011  ;;  %v632_v52 = vadd.f32 1.0, %v1010_v50 }
 0x17b   : > { %v1014_v53 = vpop.eup %1013  ;;  %v633_v54 = vadd.f32 1.0, %v1012_v51 }
 0x17c   : > { %v1016_v55 = vpop.eup %1015  ;;  %1017 = vrcp.f32 %v632_v52  ;;  %v634_v56 = vadd.f32 1.0, %v1014_v53 }
 0x17d   : > { %1019 = vrcp.f32 %v633_v54  ;;  %v635_v57 = vadd.f32 1.0, %v1016_v55 }
 0x17e   : > { %1021 = vrcp.f32 %v634_v56 }
 0x17f   : > { %1023 = vrcp.f32 %v635_v57 }
 0x186   : > { %v1018_v58 = vpop.eup %1017 }
 0x187   : > { %v1020_v59 = vpop.eup %1019  ;;  %v640_v60 = vmul.f32 %v1018_v58, %v445_v34 }
 0x188   : > { %v1022_v61 = vpop.eup %1021  ;;  %v641_v62 = vmul.f32 %v1020_v59, %v447_v36 }
 0x189   : > { %v1024_v63 = vpop.eup %1023  ;;  %v642_v0 = vmul.f32 %v1022_v61, %v449_v38  ;;  %v648_v1 = vmul.f32 %v640_v60, %v596_v46 }
 0x18a   : > { %v643_v2 = vmul.f32 %v1024_v63, %v451_v41  ;;  %v649_v3 = vmul.f32 %v641_v62, %v598_v47 }
 0x18b   : > { %v650_v4 = vmul.f32 %v642_v0, %v600_v48 }
 0x18c   : > { %v870_v5 = vpack.c.bf16 %v649_v3, %v648_v1  ;;  %v651_v6 = vmul.f32 %v643_v2, %v602_v49 }
 0x18e   : > { %664 = vst [vmem:[%s282_s4] sm:$0xff] %v870_v5  ;;  %v871_v7 = vpack.c.bf16 %v651_v6, %v650_v4 }
 0x190   : > { %665 = vst [vmem:[%s282_s4 + $0x8] sm:$0xff] %v871_v7 }
 0x191   : > { %1126 = shalt.err (!%p1123_p11)
}
 0x192   : > { %s1127_s19 = scalar_lea.hbm %s1491_s30, 256  ;;  %s1131_s6 = scalar_lea.hbm %s1543_s3, 512 }
 0x193   : > { %p1128_p9 = scmp.ne.s32.totalorder %s1491_s30, %s1127_s19  ;;  %p1132_p8 = scmp.lt.u32.totalorder %s1491_s30, %s1543_s3 }
 0x194   : > { %p1133_p2 = scmp.lt.u32.totalorder %s1131_s6, %s1127_s19  ;;  %p1135_p1 = scmp.lt.u32.totalorder %s1127_s19, %s1491_s30 }
 0x195   : > { %p1129_p10 = pnand %p1128_p9, %p1562_p7 }
 0x196   : > { %p1134_p13 = por %p1133_p2, %p1132_p8 }
 0x197   : > { %p1130_p5 = pneg %p1129_p10 }
 0x198   : > { %p1136_p12 = por %p1135_p1, %p1134_p13 }
 0x19a   : > { %p1137_p0 = pnand %p1136_p12, %p1130_p5 }
 0x19c   : > { %1140 = shalt.err (!%p1137_p0)
}
 0x19d   : > { %s1211_s4 = smov 128   ;;  %s1212_s7 = smov 256  }
 0x19e   : > { %s1213_s5 = smov 8  }
 0x19f   : > { %881 = dma.vmem_to_hbm [thread:$0]  (%p1562_p7), %s1486_s21, 256, %s1491_s30, %s667_s8, %s1211_s4, %s1212_s7, %s1213_s5  }
 0x1a0 PF: > { %s698_s27 = sand.u32 1, %s1179_s12   ;;  %p1563_p3 = scmp.ne.s32.totalorder %s1552_s25, 0 }
 0x1a1   : > { %p1564_p4 = scmp.ge.s32.totalorder %s1199_s17, 2  ;;  %s699_s10 = scalar_lea.sflag [#allocation6], %s698_s27 }
 0x1a3   : > { %p895_p6 = pnand %p1564_p4, %p1563_p3 }
 0x1a5   : > { %1174 = dma.done.wait (!%p895_p6), %s699_s10, 256  }
 0x1a6   : > { %1176 = vsyncadd (!%p895_p6), %s699_s10, 4294967040  ;;  %s20_s17 = sadd.s32 1, %s1199_s17   ;;  %s1565_s12 = smov %s1183_s13 }
 0x1a7   : > { %p17_p11 = scmp.ge.s32.totalorder %s20_s17, 4   ;;  %s1566_s13 = smov %s1187_s14 }
 0x1a8   : > { %s1567_s14 = smov %s1282_s24  ;;  %s1568_s15 = smov %s1195_s16 }
 0x1a9   : > { %s1569_s16 = smov %s1571_s18  ;;  %19 = sbr.rel (!%p17_p11) target bundleno = 7 (0x7), region = 102 }
 0x1b0   :  { %704 = vsyncpa [#allocation5], 1 }
 0x1b1   :  { %706 = vsyncpa [#allocation5 + $0x1], 1 }
 0x1b2   :  { %707 = vsyncpa [#allocation8], 1 }
 0x1b3   :  { %709 = vsyncpa [#allocation8 + $0x1], 1 }
 0x1b4   :  { %710 = vsyncpa [#allocation6], 1 }
 0x1b5   :  { %712 = vsyncpa [#allocation6 + $0x1], 1 }

</bundles_post_ra>
